<compile_context>
chip_gen: v6e
topology: v6e:2x2x1
jax: 0.10.0
libtpu: 0.0.40
codegen_flags: <defaults>
</compile_context>

<pallas_src>
import functools

import jax
import jax.numpy as jnp
from jax import lax
from jax.experimental import pallas as pl
from jax.experimental.pallas import tpu as pltpu

NEG_SLOPE = 0.2       # GATConv default negative_slope
MASK_NEG = -1e30      # additive mask for non-edges


# ----------------------------- kernel math ---------------------------------

def _gat_layer(x, adj, W, a_src, a_dst, b):
    """One GATConv (heads=1) on a dense adjacency.

    x: (M, Fin)  adj: (M, M)  W: (Fin, Fout)  a_src/a_dst/b: (1, Fout)
    returns: (M, Fout)
    """
    h = jnp.dot(x, W, preferred_element_type=jnp.float32)            # (M, Fout)
    s_dst = jnp.sum(h * a_dst, axis=-1, keepdims=True)               # (M, 1)  per target i
    # per-source score as a row vector without materializing h.T:
    s_src = lax.dot_general(a_src, h, (((1,), (1,)), ((), ())),
                            preferred_element_type=jnp.float32)      # (1, M)
    e = s_dst + s_src                                                # (M_i, M_j)
    e = jnp.where(e > 0, e, NEG_SLOPE * e)                           # LeakyReLU(0.2)
    e = jnp.where(adj > 0, e, MASK_NEG)                              # mask non-edges
    e_max = jnp.max(e, axis=-1, keepdims=True)
    p = jnp.exp(e - e_max)                                           # non-edges underflow to 0
    denom = jnp.sum(p, axis=-1, keepdims=True)                       # >= 1 (self-loops)
    out = jnp.dot(p, h, preferred_element_type=jnp.float32)          # aggregate unnormalized
    return out * pl.reciprocal(denom, approx=False) + b              # scale post-matmul + bias


def g2g_kernel(n_nodes,                      # static: nodes per single graph
               x_ref, adj_ref,               # (1, 2N, F), (1, 2N, 2N)  per pair
               W1_ref, aux1_ref,             # (Fin, H),  (3, H) = [a_src; a_dst; b]
               W2_ref, aux2_ref,             # (H, D),    (3, D)
               fc_ref,                       # (3, D)   = [fc_w[:D]; fc_w[D:]; [fc_b,0..]]
               out_ref):                     # (1, 1, 1)
    x = x_ref[0]
    adj = adj_ref[0]
    aux1 = aux1_ref[...]
    aux2 = aux2_ref[...]

    # fused encode of both graphs of the pair (block-diagonal adjacency)
    h = _gat_layer(x, adj, W1_ref[...], aux1[0:1], aux1[1:2], aux1[2:3])
    h = jnp.maximum(h, 0.0)                                          # F.relu
    h = _gat_layer(h, adj, W2_ref[...], aux2[0:1], aux2[1:2], aux2[2:3])

    emb1 = jnp.mean(h[:n_nodes], axis=0, keepdims=True)              # global_mean_pool g1
    emb2 = jnp.mean(h[n_nodes:], axis=0, keepdims=True)              # global_mean_pool g2

    fc = fc_ref[...]
    # fc(cat([emb1, emb2])) == emb1 . fc_w[:D] + emb2 . fc_w[D:] + fc_b
    sim = jnp.sum(emb1 * fc[0:1] + emb2 * fc[1:2], axis=-1, keepdims=True) + fc[2:3, 0:1]
    out_ref[0] = sim                                                 # (1, 1)


# ----------------------------- wrapper --------------------------------------

def g2g_similarity_batched(x_pairs, adj_pairs, params):
    """x_pairs: (B, 2N, Fin) stacked node features per pair.
       adj_pairs: (B, 2N, 2N) block-diagonal adjacency per pair (self-loops incl.).
       returns: (B, 1) similarity per pair."""
    B, M, Fin = x_pairs.shape
    n = M // 2
    H = params["W1"].shape[1]
    D = params["W2"].shape[1]

    aux1 = jnp.concatenate([params["as1"], params["ad1"], params["b1"]], axis=0)   # (3, H)
    aux2 = jnp.concatenate([params["as2"], params["ad2"], params["b2"]], axis=0)   # (3, D)
    fw = params["fc_w"]                                                             # (2D, 1)
    fc_pack = (jnp.zeros((3, D), jnp.float32)
               .at[0].set(fw[:D, 0])
               .at[1].set(fw[D:, 0])
               .at[2, 0].set(params["fc_b"][0, 0]))                                 # (3, D)

    const = lambda b: (0, 0)        # weights stay resident across grid steps
    out = pl.pallas_call(
        functools.partial(g2g_kernel, n),
        out_shape=jax.ShapeDtypeStruct((B, 1, 1), jnp.float32),
        grid_spec=pltpu.PrefetchScalarGridSpec(
            num_scalar_prefetch=0,
            grid=(B,),
            in_specs=[
                pl.BlockSpec((1, M, Fin), lambda b: (b, 0, 0)),
                pl.BlockSpec((1, M, M), lambda b: (b, 0, 0)),
                pl.BlockSpec((Fin, H), const),
                pl.BlockSpec((3, H), const),
                pl.BlockSpec((H, D), const),
                pl.BlockSpec((3, D), const),
                pl.BlockSpec((3, D), const),
            ],
            out_specs=pl.BlockSpec((1, 1, 1), lambda b: (b, 0, 0)),
        ),
        compiler_params=pltpu.CompilerParams(
            dimension_semantics=("parallel",)),      # pairs are independent -> both v7x TCs
    )(x_pairs, adj_pairs, params["W1"], aux1, params["W2"], aux2, fc_pack)
    return out.reshape(B, 1)


# ----------------------------- reference (plain JAX) ------------------------

def _gat_ref(x, adj, W, a_src, a_dst, b):
    h = x @ W
    e = (h * a_dst).sum(-1, keepdims=True) + (h * a_src).sum(-1)[None, :]
    e = jnp.where(e > 0, e, NEG_SLOPE * e)
    e = jnp.where(adj > 0, e, MASK_NEG)
    alpha = jax.nn.softmax(e, axis=-1)
    return alpha @ h + b


def g2g_reference(x1, adj1, x2, adj2, p):
    def enc(x, adj):
        h = _gat_ref(x, adj, p["W1"], p["as1"], p["ad1"], p["b1"])
        h = jnp.maximum(h, 0.0)
        h = _gat_ref(h, adj, p["W2"], p["as2"], p["ad2"], p["b2"])
        return h.mean(axis=0, keepdims=True)
    cat = jnp.concatenate([enc(x1, adj1), enc(x2, adj2)], axis=1)
    return cat @ p["fc_w"] + p["fc_b"]


# ----------------------------- setup -----------------------------------------

def make_dense_adj(edge_index, n):
    """Dense adjacency adj[dst, src] = 1, with self-loops (GATConv semantics)."""
    src, dst = edge_index[0], edge_index[1]
    adj = jnp.zeros((n, n), jnp.float32).at[dst, src].set(1.0)
    return jnp.maximum(adj, jnp.eye(n, dtype=jnp.float32))


def make_pair_inputs(x1, adj1, x2, adj2, n):
    """Stack a pair into (2N, F) nodes and a (2N, 2N) block-diagonal adjacency."""
    x = jnp.concatenate([x1, x2], axis=0)
    adj = jnp.zeros((2 * n, 2 * n), jnp.float32)
    adj = adj.at[:n, :n].set(adj1).at[n:, n:].set(adj2)
    return x, adj


def init_params(key, input_dim, hidden_dim, output_dim):
    ks = jax.random.split(key, 8)

    def glorot(k, shape):
        fan_in, fan_out = shape[0], shape[-1]
        lim = (6.0 / (fan_in + fan_out)) ** 0.5
        return jax.random.uniform(k, shape, jnp.float32, -lim, lim)

    return {
        # GATConv 1
        "W1":  glorot(ks[0], (input_dim, hidden_dim)),
        "as1": glorot(ks[1], (1, hidden_dim)),
        "ad1": glorot(ks[2], (1, hidden_dim)),
        "b1":  jnp.zeros((1, hidden_dim), jnp.float32),
        # GATConv 2
        "W2":  glorot(ks[3], (hidden_dim, output_dim)),
        "as2": glorot(ks[4], (1, output_dim)),
        "ad2": glorot(ks[5], (1, output_dim)),
        "b2":  jnp.zeros((1, output_dim), jnp.float32),
        # fc: Linear(output_dim * 2, 1)
        "fc_w": glorot(ks[6], (2 * output_dim, 1)),
        "fc_b": jax.random.uniform(ks[7], (1, 1), jnp.float32, -0.1, 0.1),
    }


if __name__ == "__main__":
    INPUT_DIM, HIDDEN_DIM, OUTPUT_DIM = 16, 32, 32
    N, E = 8, 24          # nodes / edges per graph
    B = 8                 # graph pairs per pallas_call

    key = jax.random.PRNGKey(0)
    k_p, k_data = jax.random.split(key)
    params = init_params(k_p, INPUT_DIM, HIDDEN_DIM, OUTPUT_DIM)

    xs1, adjs1, xs2, adjs2 = [], [], [], []
    x_pairs, adj_pairs = [], []
    pair_keys = jax.random.split(k_data, B)
    for b in range(B):
        kx1, ke1, kx2, ke2 = jax.random.split(pair_keys[b], 4)
        x1 = jax.random.normal(kx1, (N, INPUT_DIM), jnp.float32)
        x2 = jax.random.normal(kx2, (N, INPUT_DIM), jnp.float32)
        adj1 = make_dense_adj(jax.random.randint(ke1, (2, E), 0, N), N)
        adj2 = make_dense_adj(jax.random.randint(ke2, (2, E), 0, N), N)
        xp, ap = make_pair_inputs(x1, adj1, x2, adj2, N)
        xs1.append(x1); adjs1.append(adj1); xs2.append(x2); adjs2.append(adj2)
        x_pairs.append(xp); adj_pairs.append(ap)

    x_pairs = jnp.stack(x_pairs)        # (B, 2N, INPUT_DIM)
    adj_pairs = jnp.stack(adj_pairs)    # (B, 2N, 2N)

    sim = jax.jit(g2g_similarity_batched)(x_pairs, adj_pairs, params)
    jax.block_until_ready(sim)
    assert sim.shape == (B, 1)

    ref = jnp.concatenate(
        [g2g_reference(xs1[b], adjs1[b], xs2[b], adjs2[b], params) for b in range(B)],
        axis=0)
    assert jnp.allclose(sim, ref, rtol=1e-4, atol=1e-4), (sim, ref)

    print("KERNEL_OK")
</pallas_src>

<mosaic_0001>
module attributes {stable_mosaic.version = 11 : i64} {
  func.func @g2g_kernel(%arg0: i32, %arg1: memref<1x16x16xf32, #tpu.memory_space<vmem>>, %arg2: memref<1x16x16xf32, #tpu.memory_space<vmem>>, %arg3: memref<16x32xf32, #tpu.memory_space<vmem>>, %arg4: memref<3x32xf32, #tpu.memory_space<vmem>>, %arg5: memref<32x32xf32, #tpu.memory_space<vmem>>, %arg6: memref<3x32xf32, #tpu.memory_space<vmem>>, %arg7: memref<3x32xf32, #tpu.memory_space<vmem>>, %arg8: memref<1x1x1xf32, #tpu.memory_space<vmem>>) attributes {dimension_semantics = [#tpu.dimension_semantics<parallel>], iteration_bounds = array<i64: 8>, scalar_prefetch = 0 : i64, scratch_operands = 0 : i64, tpu.core_type = #tpu.core_type<tc>, window_params = [{transform_indices = @transform_0, window_bounds = array<i64: 1, 16, 16>}, {transform_indices = @transform_1, window_bounds = array<i64: 1, 16, 16>}, {pipeline_mode = #tpu.pipeline_mode<synchronous>, transform_indices = @transform_2, window_bounds = array<i64: 16, 32>}, {pipeline_mode = #tpu.pipeline_mode<synchronous>, transform_indices = @transform_3, window_bounds = array<i64: 3, 32>}, {pipeline_mode = #tpu.pipeline_mode<synchronous>, transform_indices = @transform_4, window_bounds = array<i64: 32, 32>}, {pipeline_mode = #tpu.pipeline_mode<synchronous>, transform_indices = @transform_5, window_bounds = array<i64: 3, 32>}, {pipeline_mode = #tpu.pipeline_mode<synchronous>, transform_indices = @transform_6, window_bounds = array<i64: 3, 32>}, {transform_indices = @transform_7, window_bounds = array<i64: 1, 1, 1>}]} {
    %c0 = arith.constant 0 : index
    %c0_0 = arith.constant 0 : index
    %c0_1 = arith.constant 0 : index
    %0 = vector.load %arg1[%c0, %c0_0, %c0_1] : memref<1x16x16xf32, #tpu.memory_space<vmem>>, vector<1x16x16xf32>
    %1 = vector.shape_cast %0 : vector<1x16x16xf32> to vector<16x16xf32>
    %c0_2 = arith.constant 0 : index
    %c0_3 = arith.constant 0 : index
    %c0_4 = arith.constant 0 : index
    %2 = vector.load %arg2[%c0_2, %c0_3, %c0_4] : memref<1x16x16xf32, #tpu.memory_space<vmem>>, vector<1x16x16xf32>
    %3 = vector.shape_cast %2 : vector<1x16x16xf32> to vector<16x16xf32>
    %c0_5 = arith.constant 0 : index
    %c0_6 = arith.constant 0 : index
    %4 = vector.load %arg4[%c0_5, %c0_6] : memref<3x32xf32, #tpu.memory_space<vmem>>, vector<3x32xf32>
    %c0_7 = arith.constant 0 : index
    %c0_8 = arith.constant 0 : index
    %5 = vector.load %arg6[%c0_7, %c0_8] : memref<3x32xf32, #tpu.memory_space<vmem>>, vector<3x32xf32>
    %c0_9 = arith.constant 0 : index
    %c0_10 = arith.constant 0 : index
    %6 = vector.load %arg3[%c0_9, %c0_10] : memref<16x32xf32, #tpu.memory_space<vmem>>, vector<16x32xf32>
    %7 = vector.extract_strided_slice %4 {offsets = [0, 0], sizes = [1, 32], strides = [1, 1]} : vector<3x32xf32> to vector<1x32xf32>
    %8 = vector.extract_strided_slice %4 {offsets = [1, 0], sizes = [1, 32], strides = [1, 1]} : vector<3x32xf32> to vector<1x32xf32>
    %9 = vector.extract_strided_slice %4 {offsets = [2, 0], sizes = [1, 32], strides = [1, 1]} : vector<3x32xf32> to vector<1x32xf32>
    %cst = arith.constant dense<0.000000e+00> : vector<16x32xf32>
    %10 = tpu.matmul %1, %6, %cst {dimension_numbers = #tpu.dot_dimension_numbers<[1], [0], [0], [1], [0, 0, 1, 1], [], []>} : vector<16x16xf32>, vector<16x32xf32>, vector<16x32xf32> -> vector<16x32xf32>
    %11 = vector.broadcast %8 : vector<1x32xf32> to vector<16x32xf32>
    %12 = arith.mulf %10, %11 : vector<16x32xf32>
    %cst_11 = arith.constant dense<0.000000e+00> : vector<16xf32>
    %13 = vector.multi_reduction <add>, %12, %cst_11 [1] : vector<16x32xf32> to vector<16xf32>
    %14 = vector.shape_cast %13 : vector<16xf32> to vector<16x1xf32>
    %cst_12 = arith.constant dense<0.000000e+00> : vector<1x16xf32>
    %15 = tpu.matmul %7, %10, %cst_12 {dimension_numbers = #tpu.dot_dimension_numbers<[1], [1], [0], [0], [0, 0, 1, 0], [], []>} : vector<1x32xf32>, vector<16x32xf32>, vector<1x16xf32> -> vector<1x16xf32>
    %16 = vector.broadcast %14 : vector<16x1xf32> to vector<16x16xf32>
    %17 = vector.broadcast %15 : vector<1x16xf32> to vector<16x16xf32>
    %18 = arith.addf %16, %17 : vector<16x16xf32>
    %cst_13 = arith.constant 0.000000e+00 : f32
    %19 = vector.broadcast %cst_13 : f32 to vector<16x16xf32>
    %20 = arith.cmpf ogt, %18, %19 : vector<16x16xf32>
    %cst_14 = arith.constant 2.000000e-01 : f32
    %21 = vector.broadcast %cst_14 : f32 to vector<16x16xf32>
    %22 = arith.mulf %21, %18 : vector<16x16xf32>
    %23 = arith.select %20, %18, %22 : vector<16x16xi1>, vector<16x16xf32>
    %cst_15 = arith.constant 0.000000e+00 : f32
    %24 = vector.broadcast %cst_15 : f32 to vector<16x16xf32>
    %25 = arith.cmpf ogt, %3, %24 : vector<16x16xf32>
    %cst_16 = arith.constant -1.000000e+30 : f32
    %26 = vector.broadcast %cst_16 : f32 to vector<16x16xf32>
    %27 = arith.select %25, %23, %26 : vector<16x16xi1>, vector<16x16xf32>
    %cst_17 = arith.constant dense<0xFF800000> : vector<16xf32>
    %28 = vector.multi_reduction <maximumf>, %27, %cst_17 [1] : vector<16x16xf32> to vector<16xf32>
    %29 = vector.shape_cast %28 : vector<16xf32> to vector<16x1xf32>
    %30 = vector.broadcast %29 : vector<16x1xf32> to vector<16x16xf32>
    %31 = arith.subf %27, %30 : vector<16x16xf32>
    %32 = math.exp %31 : vector<16x16xf32>
    %cst_18 = arith.constant dense<0.000000e+00> : vector<16xf32>
    %33 = vector.multi_reduction <add>, %32, %cst_18 [1] : vector<16x16xf32> to vector<16xf32>
    %34 = vector.shape_cast %33 : vector<16xf32> to vector<16x1xf32>
    %cst_19 = arith.constant dense<0.000000e+00> : vector<16x32xf32>
    %35 = tpu.matmul %32, %10, %cst_19 {dimension_numbers = #tpu.dot_dimension_numbers<[1], [0], [0], [1], [0, 0, 1, 1], [], []>} : vector<16x16xf32>, vector<16x32xf32>, vector<16x32xf32> -> vector<16x32xf32>
    %36 = tpu.reciprocal %34 : vector<16x1xf32> -> vector<16x1xf32>
    %37 = vector.broadcast %36 : vector<16x1xf32> to vector<16x32xf32>
    %38 = arith.mulf %35, %37 : vector<16x32xf32>
    %39 = vector.broadcast %9 : vector<1x32xf32> to vector<16x32xf32>
    %40 = arith.addf %38, %39 : vector<16x32xf32>
    %cst_20 = arith.constant 0.000000e+00 : f32
    %41 = vector.broadcast %cst_20 : f32 to vector<16x32xf32>
    %42 = arith.maximumf %40, %41 : vector<16x32xf32>
    %c0_21 = arith.constant 0 : index
    %c0_22 = arith.constant 0 : index
    %43 = vector.load %arg5[%c0_21, %c0_22] : memref<32x32xf32, #tpu.memory_space<vmem>>, vector<32x32xf32>
    %44 = vector.extract_strided_slice %5 {offsets = [0, 0], sizes = [1, 32], strides = [1, 1]} : vector<3x32xf32> to vector<1x32xf32>
    %45 = vector.extract_strided_slice %5 {offsets = [1, 0], sizes = [1, 32], strides = [1, 1]} : vector<3x32xf32> to vector<1x32xf32>
    %46 = vector.extract_strided_slice %5 {offsets = [2, 0], sizes = [1, 32], strides = [1, 1]} : vector<3x32xf32> to vector<1x32xf32>
    %cst_23 = arith.constant dense<0.000000e+00> : vector<16x32xf32>
    %47 = tpu.matmul %42, %43, %cst_23 {dimension_numbers = #tpu.dot_dimension_numbers<[1], [0], [0], [1], [0, 0, 1, 1], [], []>} : vector<16x32xf32>, vector<32x32xf32>, vector<16x32xf32> -> vector<16x32xf32>
    %48 = vector.broadcast %45 : vector<1x32xf32> to vector<16x32xf32>
    %49 = arith.mulf %47, %48 : vector<16x32xf32>
    %cst_24 = arith.constant dense<0.000000e+00> : vector<16xf32>
    %50 = vector.multi_reduction <add>, %49, %cst_24 [1] : vector<16x32xf32> to vector<16xf32>
    %51 = vector.shape_cast %50 : vector<16xf32> to vector<16x1xf32>
    %cst_25 = arith.constant dense<0.000000e+00> : vector<1x16xf32>
    %52 = tpu.matmul %44, %47, %cst_25 {dimension_numbers = #tpu.dot_dimension_numbers<[1], [1], [0], [0], [0, 0, 1, 0], [], []>} : vector<1x32xf32>, vector<16x32xf32>, vector<1x16xf32> -> vector<1x16xf32>
    %53 = vector.broadcast %51 : vector<16x1xf32> to vector<16x16xf32>
    %54 = vector.broadcast %52 : vector<1x16xf32> to vector<16x16xf32>
    %55 = arith.addf %53, %54 : vector<16x16xf32>
    %cst_26 = arith.constant 0.000000e+00 : f32
    %56 = vector.broadcast %cst_26 : f32 to vector<16x16xf32>
    %57 = arith.cmpf ogt, %55, %56 : vector<16x16xf32>
    %cst_27 = arith.constant 2.000000e-01 : f32
    %58 = vector.broadcast %cst_27 : f32 to vector<16x16xf32>
    %59 = arith.mulf %58, %55 : vector<16x16xf32>
    %60 = arith.select %57, %55, %59 : vector<16x16xi1>, vector<16x16xf32>
    %cst_28 = arith.constant 0.000000e+00 : f32
    %61 = vector.broadcast %cst_28 : f32 to vector<16x16xf32>
    %62 = arith.cmpf ogt, %3, %61 : vector<16x16xf32>
    %cst_29 = arith.constant -1.000000e+30 : f32
    %63 = vector.broadcast %cst_29 : f32 to vector<16x16xf32>
    %64 = arith.select %62, %60, %63 : vector<16x16xi1>, vector<16x16xf32>
    %cst_30 = arith.constant dense<0xFF800000> : vector<16xf32>
    %65 = vector.multi_reduction <maximumf>, %64, %cst_30 [1] : vector<16x16xf32> to vector<16xf32>
    %66 = vector.shape_cast %65 : vector<16xf32> to vector<16x1xf32>
    %67 = vector.broadcast %66 : vector<16x1xf32> to vector<16x16xf32>
    %68 = arith.subf %64, %67 : vector<16x16xf32>
    %69 = math.exp %68 : vector<16x16xf32>
    %cst_31 = arith.constant dense<0.000000e+00> : vector<16xf32>
    %70 = vector.multi_reduction <add>, %69, %cst_31 [1] : vector<16x16xf32> to vector<16xf32>
    %71 = vector.shape_cast %70 : vector<16xf32> to vector<16x1xf32>
    %cst_32 = arith.constant dense<0.000000e+00> : vector<16x32xf32>
    %72 = tpu.matmul %69, %47, %cst_32 {dimension_numbers = #tpu.dot_dimension_numbers<[1], [0], [0], [1], [0, 0, 1, 1], [], []>} : vector<16x16xf32>, vector<16x32xf32>, vector<16x32xf32> -> vector<16x32xf32>
    %73 = tpu.reciprocal %71 : vector<16x1xf32> -> vector<16x1xf32>
    %74 = vector.broadcast %73 : vector<16x1xf32> to vector<16x32xf32>
    %75 = arith.mulf %72, %74 : vector<16x32xf32>
    %76 = vector.broadcast %46 : vector<1x32xf32> to vector<16x32xf32>
    %77 = arith.addf %75, %76 : vector<16x32xf32>
    %78 = vector.extract_strided_slice %77 {offsets = [0, 0], sizes = [8, 32], strides = [1, 1]} : vector<16x32xf32> to vector<8x32xf32>
    %cst_33 = arith.constant dense<0.000000e+00> : vector<32xf32>
    %79 = vector.multi_reduction <add>, %78, %cst_33 [0] : vector<8x32xf32> to vector<32xf32>
    %80 = vector.shape_cast %79 : vector<32xf32> to vector<1x32xf32>
    %cst_34 = arith.constant 8.000000e+00 : f32
    %81 = vector.broadcast %cst_34 : f32 to vector<1x32xf32>
    %82 = arith.divf %80, %81 : vector<1x32xf32>
    %83 = vector.extract_strided_slice %77 {offsets = [8, 0], sizes = [8, 32], strides = [1, 1]} : vector<16x32xf32> to vector<8x32xf32>
    %cst_35 = arith.constant dense<0.000000e+00> : vector<32xf32>
    %84 = vector.multi_reduction <add>, %83, %cst_35 [0] : vector<8x32xf32> to vector<32xf32>
    %85 = vector.shape_cast %84 : vector<32xf32> to vector<1x32xf32>
    %cst_36 = arith.constant 8.000000e+00 : f32
    %86 = vector.broadcast %cst_36 : f32 to vector<1x32xf32>
    %87 = arith.divf %85, %86 : vector<1x32xf32>
    %c0_37 = arith.constant 0 : index
    %c0_38 = arith.constant 0 : index
    %88 = vector.load %arg7[%c0_37, %c0_38] : memref<3x32xf32, #tpu.memory_space<vmem>>, vector<3x32xf32>
    %89 = vector.extract_strided_slice %88 {offsets = [0, 0], sizes = [1, 32], strides = [1, 1]} : vector<3x32xf32> to vector<1x32xf32>
    %90 = arith.mulf %82, %89 : vector<1x32xf32>
    %91 = vector.extract_strided_slice %88 {offsets = [1, 0], sizes = [1, 32], strides = [1, 1]} : vector<3x32xf32> to vector<1x32xf32>
    %92 = arith.mulf %87, %91 : vector<1x32xf32>
    %93 = arith.addf %90, %92 : vector<1x32xf32>
    %cst_39 = arith.constant dense<0.000000e+00> : vector<1xf32>
    %94 = vector.multi_reduction <add>, %93, %cst_39 [1] : vector<1x32xf32> to vector<1xf32>
    %95 = vector.shape_cast %94 : vector<1xf32> to vector<1x1xf32>
    %96 = vector.extract_strided_slice %88 {offsets = [2, 0], sizes = [1, 1], strides = [1, 1]} : vector<3x32xf32> to vector<1x1xf32>
    %97 = arith.addf %95, %96 : vector<1x1xf32>
    %c0_40 = arith.constant 0 : index
    %c0_41 = arith.constant 0 : index
    %c0_42 = arith.constant 0 : index
    %98 = vector.load %arg8[%c0_40, %c0_41, %c0_42] : memref<1x1x1xf32, #tpu.memory_space<vmem>>, vector<1x1x1xf32>
    %99 = vector.shape_cast %98 : vector<1x1x1xf32> to vector<1x1xf32>
    %100 = vector.shape_cast %97 : vector<1x1xf32> to vector<1x1x1xf32>
    tpu.vector_store %arg8[%c0_40, %c0_41, %c0_42], %100 {strides = array<i32>} : memref<1x1x1xf32, #tpu.memory_space<vmem>>, vector<1x1x1xf32>,
    return
  }
  func.func @transform_0(%arg0: i32) -> (i32, i32, i32) {
    %c0_i32 = arith.constant 0 : i32
    %c0_i32_0 = arith.constant 0 : i32
    %c0_i32_1 = arith.constant 0 : i32
    return %arg0, %c0_i32, %c0_i32_0 : i32, i32, i32
  }
  func.func @transform_1(%arg0: i32) -> (i32, i32, i32) {
    %c0_i32 = arith.constant 0 : i32
    %c0_i32_0 = arith.constant 0 : i32
    %c0_i32_1 = arith.constant 0 : i32
    return %arg0, %c0_i32, %c0_i32_0 : i32, i32, i32
  }
  func.func @transform_2(%arg0: i32) -> (i32, i32) {
    %c0_i32 = arith.constant 0 : i32
    %c0_i32_0 = arith.constant 0 : i32
    %c0_i32_1 = arith.constant 0 : i32
    return %c0_i32, %c0_i32_0 : i32, i32
  }
  func.func @transform_3(%arg0: i32) -> (i32, i32) {
    %c0_i32 = arith.constant 0 : i32
    %c0_i32_0 = arith.constant 0 : i32
    %c0_i32_1 = arith.constant 0 : i32
    return %c0_i32, %c0_i32_0 : i32, i32
  }
  func.func @transform_4(%arg0: i32) -> (i32, i32) {
    %c0_i32 = arith.constant 0 : i32
    %c0_i32_0 = arith.constant 0 : i32
    %c0_i32_1 = arith.constant 0 : i32
    return %c0_i32, %c0_i32_0 : i32, i32
  }
  func.func @transform_5(%arg0: i32) -> (i32, i32) {
    %c0_i32 = arith.constant 0 : i32
    %c0_i32_0 = arith.constant 0 : i32
    %c0_i32_1 = arith.constant 0 : i32
    return %c0_i32, %c0_i32_0 : i32, i32
  }
  func.func @transform_6(%arg0: i32) -> (i32, i32) {
    %c0_i32 = arith.constant 0 : i32
    %c0_i32_0 = arith.constant 0 : i32
    %c0_i32_1 = arith.constant 0 : i32
    return %c0_i32, %c0_i32_0 : i32, i32
  }
  func.func @transform_7(%arg0: i32) -> (i32, i32, i32) {
    %c0_i32 = arith.constant 0 : i32
    %c0_i32_0 = arith.constant 0 : i32
    %c0_i32_1 = arith.constant 0 : i32
    return %arg0, %c0_i32, %c0_i32_0 : i32, i32, i32
  }
}

</mosaic_0001>

<bundles_post_ra>
// kernel: g2g_similarity_batched.1
= control target key start
LH: loop header
LB: loop body
LE: loop exit
PB: predicated region body
PF: predicated region fallthrough
CT: control target
= control target key end

     0   :  { %s1712_s0 = inlined_call_operand.hbm [shape: f32[8,16,16], index: 0, kind: input, shape index: {}]   ;;  %s1713_s1 = inlined_call_operand.hbm [shape: f32[8,16,16], index: 1, kind: input, shape index: {}]   ;;  %s1714_s2 = inlined_call_operand.hbm [shape: f32[16,32], index: 2, kind: input, shape index: {}]   ;;  %s1715_s3 = inlined_call_operand.vmem [shape: f32[3,32], index: 3, kind: input, shape index: {}]   ;;  %s1716_s4 = inlined_call_operand.vmem [shape: f32[32,32], index: 4, kind: input, shape index: {}]   ;;  %s1717_s5 = inlined_call_operand.vmem [shape: f32[3,32], index: 5, kind: input, shape index: {}]   ;;  %s1718_s6 = inlined_call_operand.vmem [shape: f32[3,32], index: 6, kind: input, shape index: {}]   ;;  %s1719_s7 = inlined_call_operand.vmem [shape: f32[8,1,1], index: 7, kind: output, shape index: {}]  }
   0x1   :  { %1726 = sst [smem:[#allocation10_spill]] %s1712_s0 }
   0x2   :  { %12 = vsyncpa [#allocation3], 0 }
   0x3   :  { %14 = vsyncpa [#allocation3 + $0x1], 0 }
   0x4   :  { %15 = vsyncpa [#allocation5], 0 }
   0x5   :  { %17 = vsyncpa [#allocation5 + $0x1], 0  ;;  %s1432_s24 = smov 0   ;;  %s1434_s25 = smov 0  }
   0x6   :  { %s1436_s26 = smov 0   ;;  %s1438_s27 = smov 0  }
   0x7 LB: > { %s1451_s28 = sadd.s32 4294967295, %s1383_s27   ;;  %p43_p0 = scmp.ne.s32.totalorder %s1375_s25, %s1371_s24  ;;  %s1383_s27 = sphi %s1438_s27, %s1740_s27   ;;  %s1379_s26 = sphi %s1436_s26, %s1739_s26   ;;  %s1375_s25 = sphi %s1434_s25, %s1738_s25   ;;  %s1371_s24 = sphi %s1432_s24, %s1737_s24  }
   0x8   : > { %p1724_p1 = scmp.eq.s32.totalorder %s1451_s28, 0  ;;  %p1083_p2 = scmp.ge.s32.totalorder %s1383_s27, 1 }
   0x9   : > { %p211_p3 = scmp.lt.s32.totalorder %s1383_s27, 9  ;;  %s1385_s8 = smov [#allocation6]  }
   0xa   : > { %p1459_p4 = por %p1724_p1, %p43_p0  ;;  %s223_s9 = sshll.u32 %s1385_s8, 4  ;;  %s224_s9 = int_to_ptr.vmem [resolvable:$true] %s223_s9 }
   0xb   : > { %p1463_p5 = pnand %p1083_p2, %p211_p3  ;;  %s1476_s11 = sadd.s32 1, %s1383_s27  }
   0xc   : > { %s1727_s29 = scalar_select %p1459_p4, 1, 0 }
   0xd   : > { %p1192_p6 = pneg %p1463_p5  ;;  %s30_s12 = sadd.s32 1, %s1379_s26 }
   0xe   : > { %s27_s13 = ssub.s32 %s1383_s27, %s1476_s11  ;;  %s1270_s14 = scalar_lea.vmem %s224_s9, 256 }
   0xf   : > { %p1471_p7 = pnand %p1192_p6, %p1724_p1  ;;  %p1271_p9 = scmp.ne.s32.totalorder %s224_s9, %s1270_s14 }
  0x10   : > { %p1278_p12 = scmp.lt.s32.totalorder %s224_s9, %s224_s9  ;;  %p1279_p13 = scmp.lt.s32.totalorder %s1270_s14, %s1270_s14 }
  0x11   : > { %p1261_p8 = pneg %p1471_p7 }
  0x12   : > { %p1280_p0 = por %p1279_p13, %p1278_p12 }
  0x13   : > { %p1273_p10 = pnand %p1271_p9, %p1261_p8 }
  0x15   : > { %p1274_p11 = pneg %p1273_p10 }
  0x17   : > { %p1281_p2 = pnand %p1280_p0, %p1274_p11 }
  0x19   : > { %1284 = shalt.err (!%p1281_p2)
}
  0x1a   : > { %s1720_s15 = smov 128   ;;  %s1722_s16 = smov 8  }
  0x1b   : > { %1195 = dma.hbm_to_vmem [thread:$0]  (!%p1471_p7), %s1714_s2, 256, %s224_s9, [#allocation5], %s1720_s15, %s1720_s15, %s1722_s16  }
  0x1c   : > { %p28_p3 = scmp.eq.s32.totalorder %s27_s13, 0  ;;  %p37_p6 = scmp.ne.s32.totalorder %s1379_s26, %s1375_s25 }
  0x1d   : > { %p38_p8 = scmp.eq.s32.totalorder %s1383_s27, 0  ;;  %p1204_p9 = scmp.lt.s32.totalorder %s1383_s27, 8 }
  0x1e   : > { %s1496_s19 = scalar_select %p28_p3, %s1379_s26, %s30_s12  }
  0x1f   : > { %p39_p10 = por %p38_p8, %p37_p6  ;;  %s249_s20 = sand.u32 1, %s1379_s26  }
  0x20   : > { %s1086_s21 = sshll.u32 %s249_s20, 4  ;;  %s1112_s22 = sshll.u32 %s1383_s27, 8 }
  0x21   : > { %s1730_s0 = sld [smem:[#allocation10_spill]]  ;;  %s253_s10 = scalar_lea.vmem [#allocation2], %s1086_s21 }
  0x22   : > { %s260_s9 = sshll.u32 %s253_s10, 4  ;;  %p1507_p7 = pnand %p1204_p9, %p39_p10  ;;  %s1505_s9 = int_to_ptr.vmem [resolvable:$true] %s260_s9 }
  0x23   : > { %s1514_s17 = scalar_lea.hbm %s1713_s1, %s1112_s22  ;;  %s274_s18 = scalar_lea.vmem [#allocation4], %s1086_s21 }
  0x24   : > { %s1516_s23 = sshll.u32 %s274_s18, 4  ;;  %s1518_s24 = scalar_lea.sflag [#allocation3], %s249_s20  ;;  %s1549_s23 = int_to_ptr.vmem [resolvable:$true] %s1516_s23 }
  0x25   : > { %p1287_p12 = pneg %p1507_p7 }
  0x27   : > { %s1503_s8 = scalar_lea.hbm %s1730_s0, %s1112_s22  ;;  %s1290_s12 = scalar_lea.hbm %s1730_s0, 2048 }
  0x28   : > { %s1285_s15 = scalar_lea.hbm %s1503_s8, 256  ;;  %p1291_p2 = scmp.lt.s32.totalorder %s1503_s8, %s1730_s0 }
  0x29   : > { %p1286_p11 = scmp.ne.s32.totalorder %s1503_s8, %s1285_s15  ;;  %p1292_p3 = scmp.lt.s32.totalorder %s1290_s12, %s1285_s15 }
  0x2b   : > { %p1288_p13 = pnand %p1287_p12, %p1286_p11  ;;  %p1293_p6 = por %p1292_p3, %p1291_p2 }
  0x2d   : > { %p1289_p0 = pneg %p1288_p13 }
  0x2f   : > { %p1294_p8 = pnand %p1293_p6, %p1289_p0 }
  0x31   : > { %1297 = shalt.err (!%p1294_p8)
}
  0x32   : > { %s1298_s20 = scalar_lea.vmem %s1505_s9, 256  ;;  %s1388_s16 = smov [#allocation2]  }
  0x33   : > { %p1299_p9 = scmp.ne.s32.totalorder %s1505_s9, %s1298_s20  ;;  %s1303_s21 = sshll.u32 %s1388_s16, 4  ;;  %s1304_s21 = int_to_ptr.vmem [resolvable:$false] %s1303_s21 }
  0x34   : > { %s1305_s18 = scalar_lea.vmem %s1304_s21, 512  ;;  %p1306_p13 = scmp.lt.s32.totalorder %s1505_s9, %s1304_s21 }
  0x35   : > { %p1301_p10 = pnand %p1299_p9, %p1287_p12  ;;  %p1307_p1 = scmp.lt.s32.totalorder %s1305_s18, %s1298_s20 }
  0x37   : > { %p1302_p11 = pneg %p1301_p10  ;;  %p1308_p4 = por %p1307_p1, %p1306_p13 }
  0x39   : > { %p1309_p2 = pnand %p1308_p4, %p1302_p11 }
  0x3b   : > { %1312 = shalt.err (!%p1309_p2)
}
  0x3c   : > { %s1732_s15 = smov 8   ;;  %s1733_s10 = smov 128  }
  0x3d   : > { %1199 = dma.hbm_to_vmem [thread:$0]  (!%p1507_p7), %s1503_s8, 256, %s1505_s9, %s1518_s24, %s1733_s10, %s1733_s10, %s1732_s15  }
  0x3e   : > { %s270_s12 = sand.u32 1, %s1383_s27   ;;  %s1313_s22 = scalar_lea.hbm %s1514_s17, 256 }
  0x3f   : > { %s271_s14 = scalar_lea.sflag [#allocation5], %s270_s12  ;;  %p1314_p1 = scmp.ne.s32.totalorder %s1514_s17, %s1313_s22 }
  0x40   : > { %s1318_s21 = scalar_lea.hbm %s1713_s1, 2048  ;;  %p1319_p3 = scmp.lt.s32.totalorder %s1514_s17, %s1713_s1 }
  0x41   : > { %p1316_p4 = pnand %p1314_p1, %p1287_p12  ;;  %p1320_p6 = scmp.lt.s32.totalorder %s1318_s21, %s1313_s22 }
  0x43   : > { %p1317_p0 = pneg %p1316_p4  ;;  %p1321_p8 = por %p1320_p6, %p1319_p3 }
  0x45   : > { %p1322_p9 = pnand %p1321_p8, %p1317_p0 }
  0x47   : > { %1325 = shalt.err (!%p1322_p9)
}
  0x48   : > { %s1326_s27 = scalar_lea.vmem %s1549_s23, 256  ;;  %s1389_s8 = smov [#allocation4]  }
  0x49   : > { %p1327_p10 = scmp.ne.s32.totalorder %s1549_s23, %s1326_s27  ;;  %s1331_s9 = sshll.u32 %s1389_s8, 4  ;;  %s1332_s9 = int_to_ptr.vmem [resolvable:$false] %s1331_s9 }
  0x4a   : > { %s1333_s24 = scalar_lea.vmem %s1332_s9, 512  ;;  %p1334_p2 = scmp.lt.s32.totalorder %s1549_s23, %s1332_s9 }
  0x4b   : > { %p1329_p11 = pnand %p1327_p10, %p1287_p12  ;;  %p1335_p1 = scmp.lt.s32.totalorder %s1333_s24, %s1326_s27 }
  0x4d   : > { %p1330_p13 = pneg %p1329_p11  ;;  %p1336_p4 = por %p1335_p1, %p1334_p2 }
  0x4f   : > { %p1337_p3 = pnand %p1336_p4, %p1330_p13 }
  0x51   : > { %1340 = shalt.err (!%p1337_p3)
}
  0x52   : > { %1202 = dma.hbm_to_vmem [thread:$0]  (!%p1507_p7), %s1514_s17, 256, %s1549_s23, %s271_s14, %s1733_s10, %s1733_s10, %s1732_s15  }
  0x53   : > { %293 = sbr.rel (%p1463_p5) target bundleno = 1784 (0x6f8), region = 48  ;;  %s295_s0 = sand.u32 (!%p1463_p5), 1, %s1375_s25  }
  0x54   : > { %s1580_s12 = sshll.u32 (!%p1463_p5), %s295_s0, 4  ;;  %s296_s22 = scalar_lea.sflag (!%p1463_p5), [#allocation3], %s295_s0 }
  0x55   : > { %s299_s20 = scalar_lea.vmem (!%p1463_p5), [#allocation2], %s1580_s12  ;;  %p1734_p12 = scmp.ne.s32.totalorder (!%p1463_p5), %s1727_s29, 0 }
  0x58   : > { %1358 = dma.done.wait (%p1734_p12), %s296_s22, 256  }
  0x59   : > { %1360 = vsyncadd (%p1734_p12), %s296_s22, 4294967040  ;;  %s304_s13 = sand.u32 1, %s1451_s28   ;;  %s308_s30 = scalar_lea.vmem [#allocation4], %s1580_s12 }
  0x5a   : > { %s305_s17 = scalar_lea.sflag [#allocation5], %s304_s13 }
  0x5b   : > { %1362 = dma.done.wait (%p1734_p12), %s305_s17, 256  }
  0x5c   : > { %1364 = vsyncadd (%p1734_p12), %s305_s17, 4294967040  ;;  %p1735_p5 = scmp.eq.s32.totalorder %s1451_s28, 0 }
  0x5e   : > { %1366 = dma.done.wait (%p1735_p5), [#allocation5], 256   ;;  %p1736_p7 = pmov %p1735_p5 }
  0x5f   : > { %vm357_vm0 = vcmask 130048   ;;  %v356_v0 = vld [vmem:[#allocation6 + $0x8] sm:$0xff]  ;;  %v355_v1 = vld [vmem:[#allocation6] sm:$0xff]  ;;  %v1390_v4 = vmov 0.0   ;;  %vm1391_vm1 = vmmov 0   ;;  %v439_v5 = vlaneseq  ;;  %v661_v44 = vld [vmem:[%s1716_s4 + $0x18] sm:$0xff] }
  0x60   : > { %1368 = vsyncadd (%p1736_p7), [#allocation5], 4294967040  ;;  %v349_v2 = vld [vmem:[%s299_s20] sm:$0xff]  ;;  %1138 = vmatprep.subr.mxu0 %v356_v0  ;;  %v350_v3 = vld [vmem:[%s299_s20 + $0x8] sm:$0xff]  ;;  %1145 = vmatprep.subr.mxu1 %v1390_v4  ;;  %vm445_vm2 = vcmask 261120   ;;  %vm981_vm9 = vcmask 253952  }
  0x61   : > { %1142 = vmatprep.mubr.msk.f32.mxu0 %vm357_vm0, %v349_v2  ;;  %1139 = vmatpush3.msra.mxu0 %v356_v0  ;;  %v1602_v6 = vshrl.u32 %v439_v5, 7  ;;  %v1608_v8 = vld [vmem:[%s1715_s3] sm:$0x7]  ;;  %v1633_v25 = vld [vmem:[%s308_s30 + $0x8] sm:$0xff]  ;;  %v660_v45 = vld [vmem:[%s1716_s4 + $0x10] sm:$0xff]  ;;  %p346_p0 = scmp.lt.s32.totalorder %s1451_s28, 7 }
  0x62   : > { %1140 = vmatprep.subr.mxu0 %v355_v1  ;;  %1149 = vmatprep.mubr.msk.f32.mxu1 %vm1391_vm1, %v1390_v4  ;;  %v1628_v20 = vld [vmem:[%s308_s30] sm:$0xff]  ;;  %vm544_vm6 = vcmp.gt.f32.partialorder %v1633_v25, 0.0  ;;  %v659_v46 = vld [vmem:[%s1716_s4 + $0x8] sm:$0xff]  ;;  %vm989_vm10 = vcmask 0  }
  0x63   : > { %1141 = vmatpush3.msra.mxu0 %v355_v1  ;;  %v441_v7 = vsub.s32 1, %v1602_v6  ;;  %v533_v17 = vsub.s32 0, %v1602_v6  ;;  %vm543_vm3 = vcmp.gt.f32.partialorder %v1628_v20, 0.0  ;;  %v658_v47 = vld [vmem:[%s1716_s4] sm:$0xff]  ;;  %v652_v50 = vsub.s32 2, %v1602_v6  ;;  %s1742_s28 = smov (!%p346_p0, %s1451_s28), 7 }
  0x64   : > { %1143 = vmatmul.mubr.msk.f32.vlgmr.msra.gmra.mxu0 %vm357_vm0, %v350_v3  ;;  %v354_v62 = vld [vmem:[%s1717_s5] sm:$0x7]  ;;  %s348_s13 = scalar_lea.vmem %s1719_s7, %s1742_s28 }
  0x65   : > { %v442_v10 = vrot.slane %v1608_v8, %v441_v7  ;;  %v653_v53 = vrot.slane %v1608_v8, %v652_v50  ;;  %v746_v63 = vrot.slane %v354_v62, %v441_v7 }
 0x124   : > { %v1144_v9 = vpop.f32.mrf.mxu0 }
 0x125   : > { %1146 = vmatpush3.xpose.msk.msra.mxu1 %vm445_vm2, %v1144_v9  ;;  %1152 = vmatprep.subr.mxu0 %v1144_v9  ;;  %v444_v14 = vmul.f32 %v1144_v9, %v442_v10 }
 0x126   : > { %v430_v11 = vpop.f32.mrf.mxu0  ;;  %1153 = vmatpush3.msra.mxu0 %v1144_v9  ;;  %1147 = vmatprep.subr.mxu1 %v1390_v4 }
 0x127   : > { %1154 = vmatprep.subr.mxu0 %v430_v11  ;;  %v443_v12 = vmul.f32 %v442_v10, %v430_v11  ;;  %v449_v15 = vsel %vm445_vm2, %v444_v14, 0.0 }
 0x128   : > { %1155 = vmatpush3.msra.mxu0 %v430_v11 }
 0x129   : > { %1148 = vmatpush3.xpose.msk.msra.mxu1 %vm445_vm2, %v430_v11  ;;  %v446_v13 = vsel %vm445_vm2, %v443_v12, 0.0  ;;  %1159 = vmatprep.subr.mxu0 %v661_v44 }
 0x12a   : > { %447 = vadd.xlane.f32.xlu0 %v446_v13  ;;  %1170 = vmatprep.subr.mxu1 %v1390_v4 }
 0x12c   : > { %1150 = vmatmul.mubr.msk.f32.vlgmr.msra.gmra.mxu1 %vm445_vm2, %v1608_v8 }
 0x12d   : > { %1174 = vmatprep.mubr.msk.f32.mxu1 %vm1391_vm1, %v1390_v4 }
 0x12e   : > { %450 = vadd.xlane.f32.xlu0 %v449_v15 }
 0x1b3   : > { %v448_v16 = vpop.xlane.xlu0 %447 }
 0x1b7   : > { %v451_v21 = vpop.xlane.xlu0 %450 }
 0x1ec   : > { %v527_v18 = vpop.f32.mrf.mxu1 }
 0x1ed   : > { %v534_v19 = vrot.slane %v527_v18, %v533_v17 }
 0x1ee   : > { %v1151_v22 = vpop.f32.mrf.mxu1 }
 0x1ef   : > { %v535_v23 = vadd.f32 %v534_v19, %v448_v16  ;;  %v536_v24 = vadd.f32 %v534_v19, %v451_v21 }
 0x1f1   : > { %vm537_vm4 = vcmp.gt.f32.partialorder %v535_v23, 0.0  ;;  %v539_v26 = vmul.f32 0.2, %v535_v23  ;;  %vm538_vm5 = vcmp.gt.f32.partialorder %v536_v24, 0.0  ;;  %v540_v27 = vmul.f32 0.2, %v536_v24 }
 0x1f3   : > { %v541_v28 = vsel %vm537_vm4, %v535_v23, %v539_v26  ;;  %v542_v29 = vsel %vm538_vm5, %v536_v24, %v540_v27 }
 0x1f4   : > { %v545_v30 = vsel %vm543_vm3, %v541_v28, -1e+30  ;;  %v546_v32 = vsel %vm544_vm6, %v542_v29, -1e+30 }
 0x1f5   : > { %v547_v31 = vsel %vm357_vm0, %v545_v30, -inf  ;;  %v550_v33 = vsel %vm357_vm0, %v546_v32, -inf }
 0x1f6   : > { %548 = vmax.xlane.f32.xlu1 %v547_v31 }
 0x1fa   : > { %551 = vmax.xlane.f32.xlu1 %v550_v33 }
 0x27f   : > { %v549_v34 = vpop.xlane.xlu1 %548 }
 0x280   : > { %v553_v35 = vsub.f32 %v545_v30, %v549_v34  ;;  %v954_v34 = vrot.slane %v354_v62, %v652_v50 }
 0x282   : > { %v555_v36 = vmul.f32 1.442695, %v553_v35 }
 0x283   : > { %v552_v37 = vpop.xlane.xlu1 %551 }
 0x284   : > { %1243 = vpow2.f32 %v555_v36  ;;  %v554_v38 = vsub.f32 %v546_v32, %v552_v37 }
 0x286   : > { %v557_v39 = vmul.f32 1.442695, %v554_v38 }
 0x288   : > { %1245 = vpow2.f32 %v557_v39 }
 0x291   : > { %v1244_v40 = vpop.eup %1243 }
 0x292   : > { %1156 = vmatprep.mubr.msk.f32.mxu0 %vm357_vm0, %v1244_v40  ;;  %v559_v41 = vsel %vm357_vm0, %v1244_v40, 0.0 }
 0x293   : > { %560 = vadd.xlane.f32.xlu0 %v559_v41 }
 0x295   : > { %v1246_v42 = vpop.eup %1245 }
 0x296   : > { %1157 = vmatmul.mubr.msk.f32.vlgmr.msra.gmra.mxu0 %vm357_vm0, %v1246_v42  ;;  %v562_v43 = vsel %vm357_vm0, %v1246_v42, 0.0 }
 0x297   : > { %563 = vadd.xlane.f32.xlu1 %v562_v43  ;;  %1160 = vmatpush3.msra.mxu0 %v661_v44 }
 0x298   : > { %1161 = vmatprep.subr.mxu0 %v660_v45 }
 0x299   : > { %1162 = vmatpush3.msra.mxu0 %v660_v45 }
 0x29a   : > { %1163 = vmatprep.subr.mxu0 %v659_v46 }
 0x29b   : > { %1164 = vmatpush3.msra.mxu0 %v659_v46 }
 0x29c   : > { %1165 = vmatprep.subr.mxu0 %v658_v47 }
 0x29d   : > { %1166 = vmatpush3.msra.mxu0 %v658_v47 }
 0x31c   : > { %v561_v49 = vpop.xlane.xlu0 %560 }
 0x320   : > { %v564_v48 = vpop.xlane.xlu1 %563 }
 0x321   : > { %1247 = vrcp.f32 %v564_v48 }
 0x322   : > { %1249 = vrcp.f32 %v561_v49 }
 0x32e   : > { %v1248_v51 = vpop.eup %1247 }
 0x32f   : > { %v1250_v55 = vpop.eup %1249 }
 0x356   : > { %v1158_v52 = vpop.f32.mrf.mxu0 }
 0x357   : > { %v649_v54 = vmul.f32 %v1248_v51, %v1158_v52 }
 0x358   : > { %v637_v56 = vpop.f32.mrf.mxu0 }
 0x359   : > { %v648_v57 = vmul.f32 %v1250_v55, %v637_v56  ;;  %v655_v58 = vadd.f32 %v653_v53, %v649_v54  ;;  %v974_v55 = vld [vmem:[%s1718_s6] sm:$0x7] }
 0x35b   : > { %v654_v59 = vadd.f32 %v653_v53, %v648_v57  ;;  %v657_v61 = vmax.f32 %v655_v58, 0.0 }
 0x35d   : > { %v656_v60 = vmax.f32 %v654_v59, 0.0 }
 0x35f   : > { %1167 = vmatprep.mubr.msk.f32.mxu0 %vm445_vm2, %v656_v60 }
 0x360   : > { %1168 = vmatmul.mubr.msk.f32.vlgmr.msra.gmra.mxu0 %vm445_vm2, %v657_v61 }
 0x420   : > { %v1169_v0 = vpop.f32.mrf.mxu0 }
 0x421   : > { %1171 = vmatpush3.xpose.msk.msra.mxu1 %vm445_vm2, %v1169_v0  ;;  %1177 = vmatprep.subr.mxu0 %v1169_v0  ;;  %v748_v1 = vmul.f32 %v1169_v0, %v746_v63 }
 0x422   : > { %v734_v2 = vpop.f32.mrf.mxu0  ;;  %1178 = vmatpush3.msra.mxu0 %v1169_v0  ;;  %1172 = vmatprep.subr.mxu1 %v1390_v4  ;;  %v986_v0 = vrot.slane %v974_v55, 2 }
 0x423   : > { %1179 = vmatprep.subr.mxu0 %v734_v2  ;;  %v752_v3 = vsel %vm445_vm2, %v748_v1, 0.0  ;;  %v747_v5 = vmul.f32 %v746_v63, %v734_v2 }
 0x424   : > { %753 = vadd.xlane.f32.xlu1 %v752_v3  ;;  %1180 = vmatpush3.msra.mxu0 %v734_v2 }
 0x425   : > { %1173 = vmatpush3.xpose.msk.msra.mxu1 %vm445_vm2, %v734_v2  ;;  %v749_v8 = vsel %vm445_vm2, %v747_v5, 0.0 }
 0x426   : > { %750 = vadd.xlane.f32.xlu0 %v749_v8 }
 0x428   : > { %1175 = vmatmul.mubr.msk.f32.vlgmr.msra.gmra.mxu1 %vm445_vm2, %v354_v62 }
 0x4ad   : > { %v754_v9 = vpop.xlane.xlu1 %753 }
 0x4af   : > { %v751_v11 = vpop.xlane.xlu0 %750 }
 0x4e8   : > { %v830_v7 = vpop.f32.mrf.mxu1 }
 0x4e9   : > { %v837_v10 = vrot.slane %v830_v7, %v533_v17 }
 0x4ea   : > { %v1176_v4 = vpop.f32.mrf.mxu1 }
 0x4eb   : > { %v838_v12 = vadd.f32 %v837_v10, %v751_v11  ;;  %v839_v13 = vadd.f32 %v837_v10, %v754_v9 }
 0x4ed   : > { %vm841_vm7 = vcmp.gt.f32.partialorder %v839_v13, 0.0  ;;  %v843_v14 = vmul.f32 0.2, %v839_v13  ;;  %vm840_vm8 = vcmp.gt.f32.partialorder %v838_v12, 0.0  ;;  %v842_v15 = vmul.f32 0.2, %v838_v12 }
 0x4ef   : > { %v845_v16 = vsel %vm841_vm7, %v839_v13, %v843_v14  ;;  %v844_v18 = vsel %vm840_vm8, %v838_v12, %v842_v15 }
 0x4f0   : > { %v847_v19 = vsel %vm544_vm6, %v845_v16, -1e+30  ;;  %v846_v21 = vsel %vm543_vm3, %v844_v18, -1e+30 }
 0x4f1   : > { %v851_v22 = vsel %vm357_vm0, %v847_v19, -inf  ;;  %v848_v17 = vsel %vm357_vm0, %v846_v21, -inf }
 0x4f2   : > { %852 = vmax.xlane.f32.xlu1 %v851_v22  ;;  %849 = vmax.xlane.f32.xlu0 %v848_v17 }
 0x57b   : > { %v853_v23 = vpop.xlane.xlu1 %852  ;;  %v850_v24 = vpop.xlane.xlu0 %849 }
 0x57c   : > { %v855_v26 = vsub.f32 %v847_v19, %v853_v23  ;;  %v854_v27 = vsub.f32 %v846_v21, %v850_v24 }
 0x57e   : > { %v858_v28 = vmul.f32 1.442695, %v855_v26  ;;  %v856_v29 = vmul.f32 1.442695, %v854_v27 }
 0x580   : > { %1251 = vpow2.f32 %v858_v28 }
 0x581   : > { %1253 = vpow2.f32 %v856_v29 }
 0x58d   : > { %v1252_v30 = vpop.eup %1251 }
 0x58e   : > { %v1254_v25 = vpop.eup %1253  ;;  %v863_v31 = vsel %vm357_vm0, %v1252_v30, 0.0 }
 0x58f   : > { %1181 = vmatprep.mubr.msk.f32.mxu0 %vm357_vm0, %v1254_v25  ;;  %864 = vadd.xlane.f32.xlu0 %v863_v31  ;;  %v860_v20 = vsel %vm357_vm0, %v1254_v25, 0.0 }
 0x590   : > { %1182 = vmatmul.mubr.msk.f32.vlgmr.msra.gmra.mxu0 %vm357_vm0, %v1252_v30  ;;  %861 = vadd.xlane.f32.xlu1 %v860_v20 }
 0x618   : > { %v865_v32 = vpop.xlane.xlu0 %864 }
 0x619   : > { %v862_v33 = vpop.xlane.xlu1 %861  ;;  %1255 = vrcp.f32 %v865_v32 }
 0x61a   : > { %1257 = vrcp.f32 %v862_v33 }
 0x626   : > { %v1256_v35 = vpop.eup %1255 }
 0x627   : > { %v1258_v38 = vpop.eup %1257 }
 0x650   : > { %v1183_v36 = vpop.f32.mrf.mxu0 }
 0x651   : > { %v950_v37 = vmul.f32 %v1256_v35, %v1183_v36 }
 0x652   : > { %v938_v39 = vpop.f32.mrf.mxu0 }
 0x653   : > { %v956_v40 = vadd.f32 %v954_v34, %v950_v37  ;;  %v949_v41 = vmul.f32 %v1258_v38, %v938_v39 }
 0x655   : > { %v966_v42 = vsel %vm445_vm2, %v956_v40, 0.0  ;;  %v955_v43 = vadd.f32 %v954_v34, %v949_v41 }
 0x656   : > { %v967_v44 = vrot.slane %v966_v42, 4 }
 0x657   : > { %v957_v45 = vsel %vm445_vm2, %v955_v43, 0.0 }
 0x658   : > { %v968_v46 = vadd.f32 %v967_v44, %v966_v42  ;;  %v958_v47 = vrot.slane %v957_v45, 4 }
 0x65a   : > { %v969_v48 = vrot.slane %v968_v46, 2  ;;  %v959_v49 = vadd.f32 %v958_v47, %v957_v45 }
 0x65c   : > { %v970_v51 = vadd.f32 %v969_v48, %v968_v46  ;;  %v960_v6 = vrot.slane %v959_v49, 2 }
 0x65e   : > { %v961_v50 = vadd.f32 %v960_v6, %v959_v49  ;;  %v971_v52 = vrot.slane %v970_v51, 1 }
 0x660   : > { %v962_v53 = vrot.slane %v961_v50, 1  ;;  %v972_v54 = vadd.f32 %v971_v52, %v970_v51 }
 0x662   : > { %v963_v56 = vadd.f32 %v962_v53, %v961_v50  ;;  %v973_v57 = vmul.f32 0.125, %v972_v54 }
 0x664   : > { %v965_v58 = vmul.f32 0.125, %v963_v56  ;;  %v976_v59 = vmul.f32 %v974_v55, %v973_v57 }
 0x666   : > { %v975_v60 = vmul.f32 %v974_v55, %v965_v58  ;;  %v978_v61 = vrot.slane %v976_v59, 1 }
 0x668   : > { %v980_v62 = vadd.f32 %v978_v61, %v975_v60 }
 0x66a   : > { %v982_v63 = vsel %vm981_vm9, %v980_v62, 0.0 }
 0x66b   : > { %983 = vadd.xlane.f32.xlu0 %v982_v63 }
 0x6f4   : > { %v984_v1 = vpop.xlane.xlu0 %983 }
 0x6f5   : > { %v988_v2 = vadd.f32 %v986_v0, %v984_v1 }
 0x6f7   : > { %990 = vst.msk [vmem:[%s348_s13] sm:$0x1] %vm989_vm10, %v988_v2 }
 0x6f8 PF: > { %p20_p6 = scmp.ge.s32.totalorder %s1476_s11, 10   ;;  %s1737_s24 = smov %s1375_s25 }
 0x6f9   : > { %s1738_s25 = smov %s1379_s26  ;;  %s1739_s26 = smov %s1496_s19 }
 0x6fa   : > { %s1740_s27 = smov %s1476_s11  ;;  %22 = sbr.rel (!%p20_p6) target bundleno = 7 (0x7), region = 105 }
 0x6ff   :  { %1008 = vsyncpa [#allocation3], 1 }
 0x700   :  { %1010 = vsyncpa [#allocation3 + $0x1], 1 }
 0x701   :  { %1011 = vsyncpa [#allocation5], 1 }
 0x702   :  { %1013 = vsyncpa [#allocation5 + $0x1], 1 }

</bundles_post_ra>
